<compile_context>
chip_gen: v7x
topology: tpu7x:2x2x1
jax: 0.10.0
libtpu: 0.0.40
codegen_flags: <defaults>
</compile_context>

<pallas_src>
import functools

import jax
import jax.numpy as jnp
from jax import lax
from jax.experimental import pallas as pl
from jax.experimental.pallas import tpu as pltpu


def _round_up(x, m):
    return ((x + m - 1) // m) * m


def _supcon_tile(feat_row, feat_all, pos_with_self, row_start, *,
                 n_anchor, n_contrast, inv_temp, matmul_dtype):
    """Per-row-tile SupCon statistics.

    feat_row:      (TM,  Dp) f32   anchor strip (zero-padded rows/cols)
    feat_all:      (Ncp, Dp) f32   all contrast features (zero-padded)
    pos_with_self: (TM, Ncp) f32   positive mask INCLUDING the self pair
    Returns (TM, 1) f32: mean_log_prob_pos for valid anchor rows, 0 for padding.
    """
    tm = feat_row.shape[0]
    ncp = feat_all.shape[0]

    a, b = feat_row, feat_all
    if jnp.dtype(matmul_dtype) != jnp.dtype(jnp.float32):
        a = a.astype(matmul_dtype)
        b = b.astype(matmul_dtype)
    # NT contraction over the feature dim (no in-kernel transpose), MXU, f32 acc.
    s = lax.dot_general(a, b, (((1,), (1,)), ((), ())),
                        preferred_element_type=jnp.float32)
    s = s * jnp.float32(inv_temp)                                  # (TM, Ncp)

    col = lax.broadcasted_iota(jnp.int32, (tm, ncp), 1)
    row = row_start + lax.broadcasted_iota(jnp.int32, (tm, ncp), 0)
    col_valid = col < n_contrast                      # drop padded contrast cols
    contrast_mask = jnp.logical_and(col_valid, col != row).astype(jnp.float32)

    # Row max over all valid contrast columns (self included, as in reference).
    m = jnp.max(jnp.where(col_valid, s, -jnp.inf), axis=1, keepdims=True)
    shifted = s - m

    denom = jnp.sum(jnp.exp(shifted) * contrast_mask, axis=1, keepdims=True)
    log_denom = jnp.log(jnp.maximum(denom, 1e-30))

    pos = pos_with_self * contrast_mask                            # (TM, Ncp)
    mask_sum = jnp.sum(pos, axis=1, keepdims=True)                 # (TM, 1)
    pos_logit_sum = jnp.sum(pos * shifted, axis=1, keepdims=True)  # (TM, 1)
    # sum(mask * log_prob) = sum(mask * shifted) - mask_sum * log(denom)
    pos_sum = pos_logit_sum - mask_sum * log_denom
    # Guard (also protects degenerate zero-positive rows; padded rows are zeroed).
    mean_log_prob_pos = pos_sum / jnp.maximum(mask_sum, 1.0)

    row_idx = row_start + lax.broadcasted_iota(jnp.int32, (tm, 1), 0)
    row_valid = (row_idx < n_anchor).astype(jnp.float32)
    return mean_log_prob_pos * row_valid


def _supcon_kernel_labels(feat_row_ref, feat_all_ref, row_lbl_ref, col_lbl_ref,
                          o_ref, *, tm, n_anchor, n_contrast, inv_temp,
                          matmul_dtype):
    row_start = pl.program_id(0) * tm
    # Positive mask (incl. self) from a broadcast label compare: (TM,1)==(1,Ncp).
    pos = (row_lbl_ref[...] == col_lbl_ref[...]).astype(jnp.float32)
    o_ref[...] = _supcon_tile(feat_row_ref[...], feat_all_ref[...], pos,
                              row_start, n_anchor=n_anchor,
                              n_contrast=n_contrast, inv_temp=inv_temp,
                              matmul_dtype=matmul_dtype)


def _supcon_kernel_mask(feat_row_ref, feat_all_ref, mask_ref, o_ref, *, tm,
                        n_anchor, n_contrast, inv_temp, matmul_dtype):
    row_start = pl.program_id(0) * tm
    o_ref[...] = _supcon_tile(feat_row_ref[...], feat_all_ref[...],
                              mask_ref[...], row_start, n_anchor=n_anchor,
                              n_contrast=n_contrast, inv_temp=inv_temp,
                              matmul_dtype=matmul_dtype)


def supcon_loss(features, labels=None, mask=None, *, temperature=0.07,
                contrast_mode="all", base_temperature=0.07,
                block_rows=256, use_bf16_matmul=False):
    """JAX/Pallas equivalent of SupConLoss.forward (returns a scalar loss)."""
    features = jnp.asarray(features)
    if features.ndim < 3:
        raise ValueError("`features` needs to be [bsz, n_views, ...], "
                         "at least 3 dimensions are required")
    if features.ndim > 3:
        features = features.reshape(features.shape[0], features.shape[1], -1)
    features = features.astype(jnp.float32)
    bsz, n_views, dim = features.shape

    if labels is not None and mask is not None:
        raise ValueError("Cannot define both `labels` and `mask`")

    # contrast_feature = cat(unbind(features, 1), 0)  -> view-major (V*B, D)
    contrast_feature = jnp.swapaxes(features, 0, 1).reshape(n_views * bsz, dim)
    n_contrast = n_views * bsz

    if contrast_mode == "one":
        anchor_feature = contrast_feature[:bsz]       # view 0 of every sample
        anchor_count = 1
    elif contrast_mode == "all":
        anchor_feature = contrast_feature
        anchor_count = n_views
    else:
        raise ValueError(f"Unknown mode: {contrast_mode}")
    n_anchor = anchor_count * bsz

    # --- padding / tiling (lane-aligned cols & feature dim, sublane-aligned rows)
    d_pad = _round_up(dim, 128)
    tm = _round_up(min(int(block_rows), _round_up(n_anchor, 8)), 8)
    n_a_pad = _round_up(n_anchor, tm)
    n_c_pad = _round_up(n_contrast, 128)
    n_tiles = n_a_pad // tm

    feat_all = jnp.zeros((n_c_pad, d_pad), jnp.float32)
    feat_all = feat_all.at[:n_contrast, :dim].set(contrast_feature)
    feat_anchor = jnp.zeros((n_a_pad, d_pad), jnp.float32)
    feat_anchor = feat_anchor.at[:n_anchor, :dim].set(anchor_feature)

    matmul_dtype = jnp.bfloat16 if use_bf16_matmul else jnp.float32
    common = dict(tm=tm, n_anchor=n_anchor, n_contrast=n_contrast,
                  inv_temp=float(1.0 / temperature), matmul_dtype=matmul_dtype)

    in_specs = [pl.BlockSpec((tm, d_pad), lambda i: (i, 0)),
                pl.BlockSpec((n_c_pad, d_pad), lambda i: (0, 0))]
    inputs = [feat_anchor, feat_all]

    if mask is not None:
        # Arbitrary (possibly asymmetric) user mask: stream (TM, Ncp) strips.
        base_mask = jnp.asarray(mask, jnp.float32)
        mask_tiled = jnp.tile(base_mask, (anchor_count, n_views))
        mask_pad = jnp.zeros((n_a_pad, n_c_pad), jnp.float32)
        mask_pad = mask_pad.at[:n_anchor, :n_contrast].set(mask_tiled)
        kernel = functools.partial(_supcon_kernel_mask, **common)
        in_specs.append(pl.BlockSpec((tm, n_c_pad), lambda i: (i, 0)))
        inputs.append(mask_pad)
    else:
        if labels is None:
            base_labels = jnp.arange(bsz, dtype=jnp.int32)      # SimCLR eye mask
        else:
            base_labels = jnp.asarray(labels).reshape(-1).astype(jnp.int32)
            if base_labels.shape[0] != bsz:
                raise ValueError("Num of labels does not match num of features")
        col_labels = jnp.tile(base_labels, (n_views,))          # view-major order
        row_labels = col_labels[:n_anchor]
        row_lbl = jnp.full((n_a_pad, 1), -1, jnp.int32)
        row_lbl = row_lbl.at[:n_anchor, 0].set(row_labels)
        col_lbl = jnp.full((1, n_c_pad), -2, jnp.int32)
        col_lbl = col_lbl.at[0, :n_contrast].set(col_labels)
        kernel = functools.partial(_supcon_kernel_labels, **common)
        in_specs += [pl.BlockSpec((tm, 1), lambda i: (i, 0)),
                     pl.BlockSpec((1, n_c_pad), lambda i: (0, 0))]
        inputs += [row_lbl, col_lbl]

    per_anchor = pl.pallas_call(
        kernel,
        out_shape=jax.ShapeDtypeStruct((n_a_pad, 1), jnp.float32),
        grid=(n_tiles,),
        in_specs=in_specs,
        out_specs=pl.BlockSpec((tm, 1), lambda i: (i, 0)),
        compiler_params=pltpu.CompilerParams(
            dimension_semantics=("parallel",),
            vmem_limit_bytes=64 * 1024 * 1024),
    )(*inputs)

    # loss.view(anchor_count, batch_size).mean()  ==  mean over all anchors.
    loss = (-(temperature / base_temperature)
            * jnp.sum(per_anchor) / jnp.float32(n_anchor))
    return loss


def _supcon_loss_ref(features, labels=None, mask=None, *, temperature=0.07,
                     contrast_mode="all", base_temperature=0.07):
    """Pure-JAX reference mirroring the PyTorch code (for verification)."""
    features = features.astype(jnp.float32)
    bsz, n_views, dim = features.shape
    if labels is None and mask is None:
        base_mask = jnp.eye(bsz, dtype=jnp.float32)
    elif labels is not None:
        labels = jnp.asarray(labels).reshape(-1, 1)
        base_mask = (labels == labels.T).astype(jnp.float32)
    else:
        base_mask = jnp.asarray(mask, jnp.float32)
    contrast_feature = jnp.swapaxes(features, 0, 1).reshape(n_views * bsz, dim)
    if contrast_mode == "one":
        anchor_feature, anchor_count = contrast_feature[:bsz], 1
    else:
        anchor_feature, anchor_count = contrast_feature, n_views
    n_a = anchor_count * bsz
    n_c = n_views * bsz
    logits = jnp.matmul(anchor_feature, contrast_feature.T) / temperature
    logits = logits - jnp.max(logits, axis=1, keepdims=True)
    m = jnp.tile(base_mask, (anchor_count, n_views))
    logits_mask = jnp.ones((n_a, n_c), jnp.float32)
    logits_mask = logits_mask.at[jnp.arange(n_a), jnp.arange(n_a)].set(0.0)
    m = m * logits_mask
    exp_logits = jnp.exp(logits) * logits_mask
    log_prob = logits - jnp.log(jnp.sum(exp_logits, axis=1, keepdims=True))
    mean_log_prob_pos = jnp.sum(m * log_prob, axis=1) / jnp.sum(m, axis=1)
    loss = -(temperature / base_temperature) * mean_log_prob_pos
    return jnp.mean(loss)


if __name__ == "__main__":
    key = jax.random.PRNGKey(0)
    k1, k2, k3 = jax.random.split(key, 3)

    # Case 1: small SupCon / SimCLR setup (L2-normalized features).
    bsz, n_views, dim = 8, 2, 128
    feats = jax.random.normal(k1, (bsz, n_views, dim), jnp.float32)
    feats = feats / jnp.linalg.norm(feats, axis=-1, keepdims=True)
    labels = jnp.array([0, 1, 2, 3, 0, 1, 2, 3], jnp.int32)

    checks = []
    checks.append(("sup/all", supcon_loss(feats, labels=labels),
                   _supcon_loss_ref(feats, labels=labels)))
    checks.append(("simclr/all", supcon_loss(feats),
                   _supcon_loss_ref(feats)))
    checks.append(("sup/one",
                   supcon_loss(feats, labels=labels, contrast_mode="one"),
                   _supcon_loss_ref(feats, labels=labels, contrast_mode="one")))

    # Explicit (asymmetric) mask path.
    eye = jnp.eye(bsz, dtype=jnp.float32)
    cmask = jnp.clip(eye + jnp.roll(eye, 1, axis=1), 0.0, 1.0)
    checks.append(("mask/all", supcon_loss(feats, mask=cmask),
                   _supcon_loss_ref(feats, mask=cmask)))

    # Case 2: multi-tile grid exercising row/col/feature padding.
    bsz2, n_views2, dim2 = 80, 2, 96
    feats2 = jax.random.normal(k2, (bsz2, n_views2, dim2), jnp.float32)
    feats2 = feats2 / jnp.linalg.norm(feats2, axis=-1, keepdims=True)
    labels2 = jax.random.randint(k3, (bsz2,), 0, 10, jnp.int32)
    checks.append(("sup/all/tiled",
                   supcon_loss(feats2, labels=labels2, block_rows=64),
                   _supcon_loss_ref(feats2, labels=labels2)))

    jax.block_until_ready([c[1] for c in checks])
    for name, got, want in checks:
        assert jnp.allclose(got, want, atol=1e-3, rtol=1e-3), (name, got, want)

    # Optional bf16-MXU fast path (lossier; validated with loose tolerance).
    loss_bf16 = supcon_loss(feats, labels=labels, use_bf16_matmul=True)
    jax.block_until_ready(loss_bf16)
    assert jnp.isfinite(loss_bf16)
    assert abs(float(loss_bf16) - float(checks[0][2])) < 0.25

    print("KERNEL_OK")
</pallas_src>

<mosaic_0001>
module attributes {stable_mosaic.version = 11 : i64} {
  func.func @_supcon_kernel_labels(%arg0: i32, %arg1: memref<16x128xf32, #tpu.memory_space<vmem>>, %arg2: memref<128x128xf32, #tpu.memory_space<vmem>>, %arg3: memref<16x1xi32, #tpu.memory_space<vmem>>, %arg4: memref<1x128xi32, #tpu.memory_space<vmem>>, %arg5: memref<16x1xf32, #tpu.memory_space<vmem>>) attributes {dimension_semantics = [#tpu.dimension_semantics<parallel>], iteration_bounds = array<i64: 1>, scalar_prefetch = 0 : i64, scratch_operands = 0 : i64, tpu.core_type = #tpu.core_type<tc>, window_params = [{transform_indices = @transform_0, window_bounds = array<i64: 16, 128>}, {pipeline_mode = #tpu.pipeline_mode<synchronous>, transform_indices = @transform_1, window_bounds = array<i64: 128, 128>}, {transform_indices = @transform_2, window_bounds = array<i64: 16, 1>}, {pipeline_mode = #tpu.pipeline_mode<synchronous>, transform_indices = @transform_3, window_bounds = array<i64: 1, 128>}, {transform_indices = @transform_4, window_bounds = array<i64: 16, 1>}]} {
    %c16_i32 = arith.constant 16 : i32
    %0 = arith.muli %arg0, %c16_i32 : i32
    %c0 = arith.constant 0 : index
    %c0_0 = arith.constant 0 : index
    %1 = vector.load %arg3[%c0, %c0_0] : memref<16x1xi32, #tpu.memory_space<vmem>>, vector<16x1xi32>
    %c0_1 = arith.constant 0 : index
    %c0_2 = arith.constant 0 : index
    %2 = vector.load %arg4[%c0_1, %c0_2] : memref<1x128xi32, #tpu.memory_space<vmem>>, vector<1x128xi32>
    %3 = vector.broadcast %1 : vector<16x1xi32> to vector<16x128xi32>
    %4 = vector.broadcast %2 : vector<1x128xi32> to vector<16x128xi32>
    %5 = arith.cmpi eq, %3, %4 : vector<16x128xi32>
    %6 = arith.extui %5 : vector<16x128xi1> to vector<16x128xi32>
    %7 = arith.sitofp %6 : vector<16x128xi32> to vector<16x128xf32>
    %c0_3 = arith.constant 0 : index
    %c0_4 = arith.constant 0 : index
    %8 = vector.load %arg1[%c0_3, %c0_4] : memref<16x128xf32, #tpu.memory_space<vmem>>, vector<16x128xf32>
    %c0_5 = arith.constant 0 : index
    %c0_6 = arith.constant 0 : index
    %9 = vector.load %arg2[%c0_5, %c0_6] : memref<128x128xf32, #tpu.memory_space<vmem>>, vector<128x128xf32>
    %cst = arith.constant dense<0.000000e+00> : vector<16x128xf32>
    %10 = tpu.matmul %8, %9, %cst {dimension_numbers = #tpu.dot_dimension_numbers<[1], [1], [0], [0], [0, 0, 1, 0], [], []>} : vector<16x128xf32>, vector<128x128xf32>, vector<16x128xf32> -> vector<16x128xf32>
    %cst_7 = arith.constant 14.2857141 : f32
    %11 = vector.broadcast %cst_7 : f32 to vector<16x128xf32>
    %12 = arith.mulf %10, %11 : vector<16x128xf32>
    %13 = tpu.iota {dimensions = array<i32: 1>} : vector<16x128xi32>
    %14 = tpu.iota {dimensions = array<i32: 0>} : vector<16x128xi32>
    %15 = vector.broadcast %0 : i32 to vector<16x128xi32>
    %16 = arith.addi %15, %14 : vector<16x128xi32>
    %c16_i32_8 = arith.constant 16 : i32
    %17 = vector.broadcast %c16_i32_8 : i32 to vector<16x128xi32>
    %18 = arith.cmpi slt, %13, %17 : vector<16x128xi32>
    %19 = arith.cmpi ne, %13, %16 : vector<16x128xi32>
    %20 = arith.andi %18, %19 : vector<16x128xi1>
    %21 = arith.extui %20 : vector<16x128xi1> to vector<16x128xi32>
    %22 = arith.sitofp %21 : vector<16x128xi32> to vector<16x128xf32>
    %cst_9 = arith.constant 0xFF800000 : f32
    %23 = vector.broadcast %cst_9 : f32 to vector<16x128xf32>
    %24 = arith.select %18, %12, %23 : vector<16x128xi1>, vector<16x128xf32>
    %cst_10 = arith.constant dense<0xFF800000> : vector<16xf32>
    %25 = vector.multi_reduction <maximumf>, %24, %cst_10 [1] : vector<16x128xf32> to vector<16xf32>
    %26 = vector.shape_cast %25 : vector<16xf32> to vector<16x1xf32>
    %27 = vector.broadcast %26 : vector<16x1xf32> to vector<16x128xf32>
    %28 = arith.subf %12, %27 : vector<16x128xf32>
    %29 = math.exp %28 : vector<16x128xf32>
    %30 = arith.mulf %29, %22 : vector<16x128xf32>
    %cst_11 = arith.constant dense<0.000000e+00> : vector<16xf32>
    %31 = vector.multi_reduction <add>, %30, %cst_11 [1] : vector<16x128xf32> to vector<16xf32>
    %32 = vector.shape_cast %31 : vector<16xf32> to vector<16x1xf32>
    %cst_12 = arith.constant 1.000000e-30 : f32
    %33 = vector.broadcast %cst_12 : f32 to vector<16x1xf32>
    %34 = arith.maximumf %32, %33 : vector<16x1xf32>
    %35 = math.log %34 : vector<16x1xf32>
    %36 = arith.mulf %7, %22 : vector<16x128xf32>
    %cst_13 = arith.constant dense<0.000000e+00> : vector<16xf32>
    %37 = vector.multi_reduction <add>, %36, %cst_13 [1] : vector<16x128xf32> to vector<16xf32>
    %38 = vector.shape_cast %37 : vector<16xf32> to vector<16x1xf32>
    %39 = arith.mulf %36, %28 : vector<16x128xf32>
    %cst_14 = arith.constant dense<0.000000e+00> : vector<16xf32>
    %40 = vector.multi_reduction <add>, %39, %cst_14 [1] : vector<16x128xf32> to vector<16xf32>
    %41 = vector.shape_cast %40 : vector<16xf32> to vector<16x1xf32>
    %42 = arith.mulf %38, %35 : vector<16x1xf32>
    %43 = arith.subf %41, %42 : vector<16x1xf32>
    %cst_15 = arith.constant 1.000000e+00 : f32
    %44 = vector.broadcast %cst_15 : f32 to vector<16x1xf32>
    %45 = arith.maximumf %38, %44 : vector<16x1xf32>
    %46 = arith.divf %43, %45 : vector<16x1xf32>
    %47 = tpu.iota {dimensions = array<i32: 0>} : vector<16x1xi32>
    %48 = vector.broadcast %0 : i32 to vector<16x1xi32>
    %49 = arith.addi %48, %47 : vector<16x1xi32>
    %c16_i32_16 = arith.constant 16 : i32
    %50 = vector.broadcast %c16_i32_16 : i32 to vector<16x1xi32>
    %51 = arith.cmpi slt, %49, %50 : vector<16x1xi32>
    %52 = arith.extui %51 : vector<16x1xi1> to vector<16x1xi32>
    %53 = arith.sitofp %52 : vector<16x1xi32> to vector<16x1xf32>
    %54 = arith.mulf %46, %53 : vector<16x1xf32>
    %c0_17 = arith.constant 0 : index
    %c0_18 = arith.constant 0 : index
    %55 = vector.load %arg5[%c0_17, %c0_18] : memref<16x1xf32, #tpu.memory_space<vmem>>, vector<16x1xf32>
    tpu.vector_store %arg5[%c0_17, %c0_18], %54 {strides = array<i32>} : memref<16x1xf32, #tpu.memory_space<vmem>>, vector<16x1xf32>,
    return
  }
  func.func @transform_0(%arg0: i32) -> (i32, i32) {
    %c0_i32 = arith.constant 0 : i32
    %c0_i32_0 = arith.constant 0 : i32
    return %arg0, %c0_i32 : i32, i32
  }
  func.func @transform_1(%arg0: i32) -> (i32, i32) {
    %c0_i32 = arith.constant 0 : i32
    %c0_i32_0 = arith.constant 0 : i32
    %c0_i32_1 = arith.constant 0 : i32
    return %c0_i32, %c0_i32_0 : i32, i32
  }
  func.func @transform_2(%arg0: i32) -> (i32, i32) {
    %c0_i32 = arith.constant 0 : i32
    %c0_i32_0 = arith.constant 0 : i32
    return %arg0, %c0_i32 : i32, i32
  }
  func.func @transform_3(%arg0: i32) -> (i32, i32) {
    %c0_i32 = arith.constant 0 : i32
    %c0_i32_0 = arith.constant 0 : i32
    %c0_i32_1 = arith.constant 0 : i32
    return %c0_i32, %c0_i32_0 : i32, i32
  }
  func.func @transform_4(%arg0: i32) -> (i32, i32) {
    %c0_i32 = arith.constant 0 : i32
    %c0_i32_0 = arith.constant 0 : i32
    return %arg0, %c0_i32 : i32, i32
  }
}

</mosaic_0001>

<bundles_post_ra>
// kernel: tpu_custom_call.1
= control target key start
LH: loop header
LB: loop body
LE: loop exit
PB: predicated region body
PF: predicated region fallthrough
CT: control target
= control target key end

     0   :  { %9 = vsyncpa [#allocation3], 0  ;;  %s627_s0 = inlined_call_operand.hbm [shape: f32[16,128], index: 0, kind: input, shape index: {}]   ;;  %s628_s1 = inlined_call_operand.hbm [shape: f32[128,128], index: 1, kind: input, shape index: {}]   ;;  %s629_s2 = inlined_call_operand.hbm [shape: s32[16,1], index: 2, kind: input, shape index: {}]   ;;  %s630_s3 = inlined_call_operand.hbm [shape: s32[1,128], index: 3, kind: input, shape index: {}]   ;;  %s631_s4 = inlined_call_operand.hbm [shape: f32[16,1], index: 4, kind: output, shape index: {}]  }
   0x1   :  { %10 = vsyncpa [#allocation6], 0 }
   0x2   :  { %11 = vsyncpa [#allocation9], 0 }
   0x3   :  { %12 = vsyncpa [#allocation4], 0  ;;  %s510_s15 = smov [#allocation5]   ;;  %s511_s17 = smov [#allocation2]  }
   0x4   :  { %s30_s16 = sshll.u32 %s510_s15, 4  ;;  %s18_s18 = sshll.u32 %s511_s17, 4  ;;  %s31_s16 = int_to_ptr.vmem [resolvable:$true] %s30_s16  ;;  %s544_s18 = int_to_ptr.vmem [resolvable:$true] %s18_s18 }
   0x5   :  { %s392_s21 = scalar_lea.hbm %s628_s1, 2048 }
   0x6   :  { %p393_p0 = scmp.ne.s32.totalorder %s628_s1, %s392_s21  ;;  %p396_p1 = scmp.lt.u32.totalorder %s392_s21, %s628_s1 }
   0x8   :  { %p398_p2 = pnand %p396_p1, %p393_p0 }
   0xa   :  { %401 = shalt.err (!%p398_p2)
}
   0xb   :  { %s402_s26 = scalar_lea.vmem %s31_s16, 2048  ;;  %p407_p4 = scmp.lt.s32.totalorder %s31_s16, %s31_s16 }
   0xc   :  { %p403_p3 = scmp.ne.s32.totalorder %s31_s16, %s402_s26  ;;  %p408_p5 = scmp.lt.s32.totalorder %s402_s26, %s402_s26 }
   0xe   :  { %p409_p6 = por %p408_p5, %p407_p4 }
  0x10   :  { %p410_p7 = pnand %p409_p6, %p403_p3 }
  0x12   :  { %413 = shalt.err (!%p410_p7)
}
  0x13   :  { %s512_s27 = smov 128   ;;  %s513_s28 = smov 8  }
  0x14   :  { %36 = dma.hbm_to_vmem [thread:$0]  %s628_s1, 2048, %s31_s16, [#allocation6], %s512_s27, %s512_s27, %s513_s28  }
  0x15   :  { %s414_s7 = scalar_lea.hbm %s627_s0, 256 }
  0x16   :  { %p415_p8 = scmp.ne.s32.totalorder %s627_s0, %s414_s7  ;;  %p418_p9 = scmp.lt.u32.totalorder %s414_s7, %s627_s0 }
  0x18   :  { %p420_p10 = pnand %p418_p9, %p415_p8 }
  0x1a   :  { %423 = shalt.err (!%p420_p10)
}
  0x1b   :  { %s424_s12 = scalar_lea.vmem %s544_s18, 256  ;;  %p429_p12 = scmp.lt.s32.totalorder %s544_s18, %s544_s18 }
  0x1c   :  { %p425_p11 = scmp.ne.s32.totalorder %s544_s18, %s424_s12  ;;  %p430_p13 = scmp.lt.s32.totalorder %s424_s12, %s424_s12 }
  0x1e   :  { %p431_p0 = por %p430_p13, %p429_p12 }
  0x20   :  { %p432_p1 = pnand %p431_p0, %p425_p11 }
  0x22   :  { %435 = shalt.err (!%p432_p1)
}
  0x23   :  { %24 = dma.hbm_to_vmem [thread:$0]  %s627_s0, 256, %s544_s18, [#allocation3], %s512_s27, %s512_s27, %s513_s28  }
  0x24   :  { %s514_s14 = smov [#allocation7]   ;;  %s515_s16 = smov [#allocation8]  }
  0x25   :  { %s42_s15 = sshll.u32 %s514_s14, 4  ;;  %s55_s17 = sshll.u32 %s515_s16, 4  ;;  %s43_s15 = int_to_ptr.vmem [resolvable:$true] %s42_s15  ;;  %s56_s17 = int_to_ptr.vmem [resolvable:$true] %s55_s17 }
  0x26   :  { %s436_s21 = scalar_lea.hbm %s629_s2, 256 }
  0x27   :  { %p437_p2 = scmp.ne.s32.totalorder %s629_s2, %s436_s21  ;;  %p440_p3 = scmp.lt.u32.totalorder %s436_s21, %s629_s2 }
  0x29   :  { %p442_p4 = pnand %p440_p3, %p437_p2 }
  0x2b   :  { %445 = shalt.err (!%p442_p4)
}
  0x2c   :  { %s446_s0 = scalar_lea.vmem %s43_s15, 256  ;;  %p451_p6 = scmp.lt.s32.totalorder %s43_s15, %s43_s15 }
  0x2d   :  { %p447_p5 = scmp.ne.s32.totalorder %s43_s15, %s446_s0  ;;  %p452_p7 = scmp.lt.s32.totalorder %s446_s0, %s446_s0 }
  0x2f   :  { %p453_p8 = por %p452_p7, %p451_p6 }
  0x31   :  { %p454_p9 = pnand %p453_p8, %p447_p5 }
  0x33   :  { %457 = shalt.err (!%p454_p9)
}
  0x34   :  { %48 = dma.hbm_to_vmem [thread:$0]  %s629_s2, 256, %s43_s15, [#allocation6], %s512_s27, %s512_s27, %s513_s28  }
  0x35   :  { %s458_s5 = scalar_lea.hbm %s630_s3, 16 }
  0x36   :  { %p459_p10 = scmp.ne.s32.totalorder %s630_s3, %s458_s5  ;;  %p462_p11 = scmp.lt.u32.totalorder %s458_s5, %s630_s3 }
  0x38   :  { %p464_p12 = pnand %p462_p11, %p459_p10 }
  0x3a   :  { %467 = shalt.err (!%p464_p12)
}
  0x3b   :  { %s468_s10 = scalar_lea.vmem %s56_s17, 16  ;;  %s472_s11 = scalar_lea.vmem %s56_s17, 32 }
  0x3c   :  { %p469_p13 = scmp.ne.s32.totalorder %s56_s17, %s468_s10  ;;  %p473_p0 = scmp.lt.s32.totalorder %s56_s17, %s56_s17 }
  0x3d   :  { %p474_p1 = scmp.lt.s32.totalorder %s472_s11, %s468_s10 }
  0x3f   :  { %p475_p2 = por %p474_p1, %p473_p0 }
  0x41   :  { %p476_p3 = pnand %p475_p2, %p469_p13 }
  0x43   :  { %479 = shalt.err (!%p476_p3)
}
  0x44   :  { %58 = dma.hbm_to_vmem [thread:$0]  %s630_s3, 16, %s56_s17, [#allocation9]  }
  0x45   :  { %502 = dma.done.wait [#allocation3], 256  }
  0x46   :  { %503 = vsyncadd [#allocation3], 4294967040 }
  0x47   :  { %504 = dma.done.wait [#allocation6], 2304  }
  0x48   :  { %505 = vsyncadd [#allocation6], 4294964992 }
  0x49   :  { %506 = dma.done.wait [#allocation9], 16  }
  0x4a   :  { %507 = vsyncadd [#allocation9], 4294967280  ;;  %v93_v0 = vld [vmem:[#allocation5] sm:$0xff]  ;;  %v94_v1 = vld [vmem:[#allocation5 + $0x8] sm:$0xff]  ;;  %v516_v27 = vmov 0   ;;  %v186_v29 = vlaneseq  ;;  %v517_v49 = vmov 0.0  }
  0x4b   :  { %v95_v2 = vld [vmem:[#allocation5 + $0x10] sm:$0xff]  ;;  %v337_v3 = vpack.c.bf16 %v94_v1, %v93_v0  ;;  %v96_v4 = vld [vmem:[#allocation5 + $0x18] sm:$0xff]  ;;  %v97_v7 = vld [vmem:[#allocation5 + $0x20] sm:$0xff]  ;;  %378 = vset.pattern.permute.xlu1 %v516_v27  ;;  %379 = vset.pattern.permute.xlu0 %v516_v27  ;;  %vm257_vm7 = vcmask 7168   ;;  %s518_s3 = smov [#allocation10]  }
  0x4c   :  { %v341_v5 = vpack.c.bf16 %v96_v4, %v95_v2  ;;  %v91_v6 = vld [vmem:[#allocation2] sm:$0xff]  ;;  %v98_v8 = vld [vmem:[#allocation5 + $0x28] sm:$0xff]  ;;  %v100_v11 = vld [vmem:[#allocation5 + $0x38] sm:$0xff]  ;;  %v187_v30 = vand.u32 127, %v186_v29  ;;  %v189_v42 = vshrl.u32 %v186_v29, 7  ;;  %s265_s1 = sshll.u32 %s518_s3, 4  ;;  %s266_s1 = int_to_ptr.vmem [resolvable:$true] %s265_s1 }
  0x4d   :  { %338 = vmatprep.subr.bf16.mxu0 %v337_v3  ;;  %334 = vmatprep.mubr.f32.mxu0 %v91_v6  ;;  %v345_v9 = vpack.c.bf16 %v98_v8, %v97_v7  ;;  %v99_v10 = vld [vmem:[#allocation5 + $0x30] sm:$0xff]  ;;  %v101_v13 = vld [vmem:[#allocation5 + $0x40] sm:$0xff]  ;;  %v102_v14 = vld [vmem:[#allocation5 + $0x48] sm:$0xff]  ;;  %s480_s13 = scalar_lea.vmem %s266_s1, 256  ;;  %p485_p5 = scmp.lt.s32.totalorder %s266_s1, %s266_s1 }
  0x4e   :  { %340 = vmatpush3.bf16.xpose.msra.mxu0 %v337_v3  ;;  %v349_v12 = vpack.c.bf16 %v100_v11, %v99_v10  ;;  %v353_v15 = vpack.c.bf16 %v102_v14, %v101_v13  ;;  %v103_v16 = vld [vmem:[#allocation5 + $0x50] sm:$0xff]  ;;  %v104_v17 = vld [vmem:[#allocation5 + $0x58] sm:$0xff]  ;;  %v105_v19 = vld [vmem:[#allocation5 + $0x60] sm:$0xff]  ;;  %vm194_vm0 = vcmp.lt.s32.totalorder %v187_v30, 16  ;;  %vm195_vm1 = vcmp.ne.s32.totalorder %v187_v30, %v189_v42  ;;  %p481_p4 = scmp.ne.s32.totalorder %s266_s1, %s480_s13  ;;  %p486_p6 = scmp.lt.s32.totalorder %s480_s13, %s480_s13 }
  0x4f   :  { %342 = vmatprep.subr.bf16.mxu0 %v341_v5  ;;  %v357_v18 = vpack.c.bf16 %v104_v17, %v103_v16  ;;  %v106_v20 = vld [vmem:[#allocation5 + $0x68] sm:$0xff]  ;;  %v107_v22 = vld [vmem:[#allocation5 + $0x70] sm:$0xff]  ;;  %v108_v23 = vld [vmem:[#allocation5 + $0x78] sm:$0xff]  ;;  %v190_v45 = vadd.s32 8, %v189_v42 }
  0x50   :  { %v361_v21 = vpack.c.bf16 %v106_v20, %v105_v19  ;;  %v365_v24 = vpack.c.bf16 %v108_v23, %v107_v22  ;;  %v92_v25 = vld [vmem:[#allocation2 + $0x8] sm:$0xff]  ;;  %v72_v26 = vld [vmem:[#allocation7] sm:$0xff]  ;;  %v73_v28 = vld [vmem:[#allocation7 + $0x8] sm:$0xff]  ;;  %p487_p7 = por %p486_p6, %p485_p5 }
  0x51   :  { %76 = vperm.xlu1 %378, %v72_v26   ;;  %v279_v46 = vld [vmem:[#allocation8] ss:$0 sm:$0xff]  ;;  %vm197_vm2 = vmand %vm194_vm0, %vm195_vm1  ;;  %vm196_vm3 = vcmp.ne.s32.totalorder %v187_v30, %v190_v45 }
  0x52   :  { %v282_v50 = vsel %vm197_vm2, 1.0, %v517_v49  ;;  %vm198_vm5 = vmand %vm194_vm0, %vm196_vm3  ;;  %p488_p8 = pnand %p487_p7, %p481_p4 }
  0x53   :  { %v283_v54 = vsel %vm198_vm5, 1.0, %v517_v49 }
  0x55   :  { %79 = vperm.xlu1 %378, %v73_v28  }
  0x56   :  { %344 = vmatpush3.bf16.xpose.msra.mxu0 %v341_v5 }
  0x57   :  { %346 = vmatprep.subr.bf16.mxu0 %v345_v9 }
  0x5e   :  { %348 = vmatpush3.bf16.xpose.msra.mxu0 %v345_v9 }
  0x5f   :  { %350 = vmatprep.subr.bf16.mxu0 %v349_v12 }
  0x66   :  { %352 = vmatpush3.bf16.xpose.msra.mxu0 %v349_v12 }
  0x67   :  { %354 = vmatprep.subr.bf16.mxu0 %v353_v15 }
  0x6e   :  { %356 = vmatpush3.bf16.xpose.msra.mxu0 %v353_v15 }
  0x6f   :  { %358 = vmatprep.subr.bf16.mxu0 %v357_v18 }
  0x76   :  { %360 = vmatpush3.bf16.xpose.msra.mxu0 %v357_v18 }
  0x77   :  { %362 = vmatprep.subr.bf16.mxu0 %v361_v21 }
  0x7e   :  { %364 = vmatpush3.bf16.xpose.msra.mxu0 %v361_v21 }
  0x7f   :  { %366 = vmatprep.subr.bf16.mxu0 %v365_v24 }
  0x86   :  { %368 = vmatpush3.bf16.xpose.msra.mxu0 %v365_v24 }
  0x8d   :  { %335 = vmatmul.mubr.f32.vlgmr.msra.gmra.mrb[0].mxu0 %v92_v25 }
  0xd0   :  { %v77_v44 = vpop.permute.xlu1 %76 }
  0xd1   :  { %vm85_vm4 = vcmp.eq.s32.totalorder %v77_v44, %v279_v46 }
  0xd2   :  { %v280_v52 = vsel %vm85_vm4, 1.0, %v517_v49 }
  0xd3   :  { %v227_v56 = vmul.f32 %v282_v50, %v280_v52 }
  0xd4   :  { %v80_v48 = vpop.permute.xlu1 %79 }
  0xd5   :  { %vm86_vm6 = vcmp.eq.s32.totalorder %v80_v48, %v279_v46 }
  0xd6   :  { %v281_v57 = vsel %vm86_vm6, 1.0, %v517_v49 }
  0xd7   :  { %v228_v58 = vmul.f32 %v283_v54, %v281_v57 }
 0x160   :  { %v336_v31 = vpop.f32.mrb[0].mxu0 }
 0x161   :  { %v175_v32 = vpop.f32.mrb[1].mxu0  ;;  %v185_v34 = vmul.f32 14.285714, %v336_v31 }
 0x162   :  { %v184_v33 = vmul.f32 14.285714, %v175_v32 }
 0x163   :  { %v204_v36 = vsel %vm194_vm0, %v185_v34, -inf }
 0x164   :  { %v203_v35 = vsel %vm194_vm0, %v184_v33, -inf }
 0x165   :  { %205 = vmax.xlane.f32.xlu0 %v203_v35 }
 0x169   :  { %207 = vmax.xlane.f32.xlu0 %v204_v36 }
 0x1f2   :  { %v206_v37 = vpop.xlane.xlu0 %205 }
 0x1f3   :  { %v209_v38 = vsub.f32 %v184_v33, %v206_v37 }
 0x1f5   :  { %v211_v39 = vmul.f32 1.442695, %v209_v38  ;;  %v233_v59 = vmul.f32 %v227_v56, %v209_v38 }
 0x1f6   :  { %v208_v40 = vpop.xlane.xlu0 %207 }
 0x1f7   :  { %380 = vpow2.f32 %v211_v39  ;;  %v210_v41 = vsub.f32 %v185_v34, %v208_v40 }
 0x1f9   :  { %v213_v43 = vmul.f32 1.442695, %v210_v41  ;;  %v234_v60 = vmul.f32 %v228_v58, %v210_v41 }
 0x1fb   :  { %382 = vpow2.f32 %v213_v43 }
 0x201   :  { %v381_v47 = vpop.eup %380 }
 0x202   :  { %v215_v51 = vmul.f32 %v381_v47, %v282_v50 }
 0x204   :  { %217 = vadd.xlane.f32.xlu0 %v215_v51 }
 0x205   :  { %v383_v53 = vpop.eup %382 }
 0x206   :  { %v216_v55 = vmul.f32 %v383_v53, %v283_v54 }
 0x208   :  { %219 = vadd.xlane.f32.xlu1 %v216_v55  ;;  %229 = vadd.xlane.f32.xlu0 %v227_v56 }
 0x20c   :  { %231 = vadd.xlane.f32.xlu0 %v228_v58 }
 0x210   :  { %235 = vadd.xlane.f32.xlu0 %v233_v59 }
 0x214   :  { %237 = vadd.xlane.f32.xlu0 %v234_v60 }
 0x291   :  { %v218_v61 = vpop.xlane.xlu0 %217 }
 0x292   :  { %v221_v62 = vmax.f32 %v218_v61, 1e-30 }
 0x294   :  { %384 = vlog2.f32 %v221_v62 }
 0x295   :  { %v230_v63 = vpop.xlane.xlu0 %229  ;;  %v220_v0 = vpop.xlane.xlu1 %219 }
 0x296   :  { %v243_v1 = vmax.f32 %v230_v63, 1.0  ;;  %v222_v2 = vmax.f32 %v220_v0, 1e-30 }
 0x298   :  { %386 = vrcp.f32 %v243_v1 }
 0x299   :  { %388 = vlog2.f32 %v222_v2  ;;  %v232_v3 = vpop.xlane.xlu0 %231 }
 0x29a   :  { %v244_v4 = vmax.f32 %v232_v3, 1.0 }
 0x29c   :  { %390 = vrcp.f32 %v244_v4 }
 0x29d   :  { %v236_v8 = vpop.xlane.xlu0 %235 }
 0x29e   :  { %v385_v5 = vpop.eup %384 }
 0x29f   :  { %v224_v6 = vmul.f32 0.6931472, %v385_v5 }
 0x2a1   :  { %v239_v7 = vmul.f32 %v230_v63, %v224_v6  ;;  %v238_v15 = vpop.xlane.xlu0 %237 }
 0x2a2   :  { %v387_v9 = vpop.eup %386 }
 0x2a3   :  { %v389_v10 = vpop.eup %388  ;;  %v241_v11 = vsub.f32 %v236_v8, %v239_v7 }
 0x2a4   :  { %v226_v12 = vmul.f32 0.6931472, %v389_v10 }
 0x2a5   :  { %v246_v13 = vmul.f32 %v387_v9, %v241_v11 }
 0x2a6   :  { %v240_v14 = vmul.f32 %v232_v3, %v226_v12  ;;  %v391_v17 = vpop.eup %390 }
 0x2a7   :  { %258 = vst.msk [vmem:[#allocation10] sm:$0xff] %vm257_vm7, %v246_v13 }
 0x2a8   :  { %v242_v16 = vsub.f32 %v238_v15, %v240_v14 }
 0x2aa   :  { %v248_v18 = vmul.f32 %v391_v17, %v242_v16 }
 0x2ac   :  { %259 = vst.msk [vmem:[#allocation10 + $0x8] sm:$0xff] %vm257_vm7, %v248_v18 }
 0x2ad   :  { %491 = shalt.err (!%p488_p8)
}
 0x2ae   :  { %s492_s16 = scalar_lea.hbm %s631_s4, 256 }
 0x2af   :  { %p493_p9 = scmp.ne.s32.totalorder %s631_s4, %s492_s16  ;;  %p496_p10 = scmp.lt.u32.totalorder %s492_s16, %s631_s4 }
 0x2b1   :  { %p498_p11 = pnand %p496_p10, %p493_p9 }
 0x2b3   :  { %501 = shalt.err (!%p498_p11)
}
 0x2b4   :  { %271 = dma.vmem_to_hbm [thread:$0]  %s266_s1, 256, %s631_s4, [#allocation4], %s512_s27, %s512_s27, %s513_s28  }
 0x2b5   :  { %508 = dma.done.wait [#allocation4], 256  }
 0x2b6   :  { %509 = vsyncadd [#allocation4], 4294967040 }
 0x2b7   :  { %275 = vsyncpa [#allocation3], 1 }
 0x2b8   :  { %276 = vsyncpa [#allocation6], 1 }
 0x2b9   :  { %277 = vsyncpa [#allocation9], 1 }
 0x2ba   :  { %278 = vsyncpa [#allocation4], 1 }

</bundles_post_ra>
